<compile_context>
chip_gen: v5e
topology: v5e:2x2
jax: 0.10.0
libtpu: 0.0.40
codegen_flags: <defaults>
</compile_context>

<pallas_src>
import math
import functools

import jax
import jax.numpy as jnp
from jax.experimental import pallas as pl
from jax.experimental.pallas import tpu as pltpu


def _lipschitz_linear_kernel(x_ref, w_ref, s_ref, b_ref, o_ref):
    """Grid = (batch tiles i, out tiles j, reduction tiles k)."""
    k = pl.program_id(2)

    @pl.when(k == 0)
    def _init():
        o_ref[...] = jnp.zeros_like(o_ref)

    # x @ W^T : contract the shared in_features axis (no transpose of W).
    # bf16 operands, f32 accumulation directly into the resident output block.
    o_ref[...] += jax.lax.dot_general(
        x_ref[...], w_ref[...],
        dimension_numbers=(((1,), (1,)), ((), ())),
        preferred_element_type=jnp.float32)

    @pl.when(k == pl.num_programs(2) - 1)
    def _epilogue():
        # Fused Lipschitz rescale + bias add, all f32.
        o_ref[...] = o_ref[...] * s_ref[...] + b_ref[...]


def _round_up(v, m):
    return ((v + m - 1) // m) * m


def _select_tiles(B, out_f, in_f, tm, tn, tk):
    """Static (Python-int) tile selection. bf16 operands -> sublane unit 16."""
    b_al = _round_up(B, 16)
    out_al = _round_up(out_f, 128)
    in_al = _round_up(in_f, 128)

    tm = min(_round_up(256 if tm is None else tm, 16), b_al)

    auto_n = tn is None
    if auto_n:
        tn = 512 if tm <= 32 else 256       # small batch -> W-read bound
    if tk is None:
        tk = 1024 if tm <= 32 else 512
    tn = min(_round_up(tn, 128), out_al)
    tk = min(_round_up(tk, 128), in_al)

    # v7x megacore: if the batch fits one tile, split the out axis so the
    # second TensorCore gets a "parallel" block (no-op on v5e/v6e).
    if (auto_n and _round_up(B, tm) // tm == 1 and tn >= out_al
            and out_al >= 256 and out_al % 256 == 0):
        tn = out_al // 2
    return tm, tn, tk


def _pad_to(a, shape):
    """Zero-pad `a` up to `shape`; no-op (no copy) if already that shape."""
    if tuple(a.shape) == tuple(shape):
        return a
    return jnp.zeros(shape, a.dtype).at[tuple(slice(0, s) for s in a.shape)].set(a)


@functools.partial(jax.jit, static_argnames=("tm", "tn", "tk"))
def lipschitz_linear(x, weight, bias, c, *, tm=None, tn=None, tk=None):
    """x: (B, in), weight: (out, in), bias: (out,), c: scalar -> (B, out) f32."""
    weight_f32 = jnp.asarray(weight, jnp.float32)
    bias = jnp.asarray(bias, jnp.float32)
    c = jnp.asarray(c, jnp.float32).reshape(())

    B, in_f = x.shape
    out_f = weight_f32.shape[0]

    # softplus(c) with torch.nn.Softplus numerics (beta=1, threshold=20) and
    # the per-row Lipschitz scale, computed once in f32 from the exact W so
    # the scale does not drift when the matmul operands are bf16.
    lipc = jnp.where(c > 20.0, c, jnp.log1p(jnp.exp(c)))
    row_sum = jnp.abs(weight_f32).sum(axis=1)
    scale = jnp.where(row_sum > 0.0, jnp.minimum(lipc / row_sum, 1.0), 1.0)

    # bf16 MXU operands (f32 accumulation happens inside the kernel).
    x_c = jnp.asarray(x, jnp.bfloat16)
    w_c = weight_f32.astype(jnp.bfloat16)

    tm, tn, tk = _select_tiles(B, out_f, in_f, tm, tn, tk)
    b_pad = _round_up(B, tm)
    out_pad = _round_up(out_f, tn)
    in_pad = _round_up(in_f, tk)

    # Pad only when needed (fast path: zero copies for tile-aligned shapes).
    x_p = _pad_to(x_c, (b_pad, in_pad))
    w_p = _pad_to(w_c, (out_pad, in_pad))
    s_p = _pad_to(scale.reshape(1, out_f), (1, out_pad))
    b_p = _pad_to(bias.reshape(1, out_f), (1, out_pad))

    grid = (b_pad // tm, out_pad // tn, in_pad // tk)

    out = pl.pallas_call(
        _lipschitz_linear_kernel,
        out_shape=jax.ShapeDtypeStruct((b_pad, out_pad), jnp.float32),
        grid=grid,
        in_specs=[
            pl.BlockSpec((tm, tk), lambda i, j, k: (i, k)),   # x     (bf16)
            pl.BlockSpec((tn, tk), lambda i, j, k: (j, k)),   # W     (bf16)
            pl.BlockSpec((1, tn), lambda i, j, k: (0, j)),    # scale (f32)
            pl.BlockSpec((1, tn), lambda i, j, k: (0, j)),    # bias  (f32)
        ],
        out_specs=pl.BlockSpec((tm, tn), lambda i, j, k: (i, j)),
        compiler_params=pltpu.CompilerParams(
            dimension_semantics=("parallel", "parallel", "arbitrary")),
        cost_estimate=pl.CostEstimate(
            flops=2 * b_pad * out_pad * in_pad,
            transcendentals=0,
            bytes_accessed=2 * (b_pad * in_pad + out_pad * in_pad)
                           + 4 * (2 * out_pad + b_pad * out_pad)),
    )(x_p, w_p, s_p, b_p)

    if (b_pad, out_pad) != (B, out_f):
        out = out[:B, :out_f]
    return out


def init_lipschitz_linear_params(key, in_features, out_features):
    """Deterministic init mirroring LipschitzLinear.initialize_parameters()."""
    stdv = 1.0 / math.sqrt(in_features)
    k_w, k_b = jax.random.split(key)
    weight = jax.random.uniform(
        k_w, (out_features, in_features), jnp.float32, minval=-stdv, maxval=stdv)
    bias = jax.random.uniform(
        k_b, (out_features,), jnp.float32, minval=-stdv, maxval=stdv)
    c = jnp.abs(weight).sum(axis=1).max()   # scalar, matches W_abs_row_sum.max()
    return weight, bias, c


def _reference_f32(x, weight, bias, c):
    """Exact (f32) forward of the PyTorch module."""
    lipc = jnp.where(c > 20.0, c, jnp.log1p(jnp.exp(c)))
    scale = jnp.minimum(lipc / jnp.abs(weight).sum(axis=1), 1.0)
    return jnp.dot(x, (weight * scale[:, None]).T,
                   precision=jax.lax.Precision.HIGHEST) + bias


def _reference_bf16(x, weight, bias, c):
    """Mirror of the kernel numerics: bf16 matmul operands, f32 accumulation,
    f32 scale (from f32 W) applied after the matmul, f32 bias add."""
    lipc = jnp.where(c > 20.0, c, jnp.log1p(jnp.exp(c)))
    scale = jnp.minimum(lipc / jnp.abs(weight).sum(axis=1), 1.0)
    acc = jnp.dot(x.astype(jnp.bfloat16), weight.astype(jnp.bfloat16).T,
                  preferred_element_type=jnp.float32)
    return acc * scale[None, :] + bias


def _check(name, y, x, w, b, c):
    y_bf = _reference_bf16(x, w, b, c)
    y_f32 = _reference_f32(x, w, b, c)
    err_bf = float(jnp.max(jnp.abs(y - y_bf)))
    err_f32 = float(jnp.max(jnp.abs(y - y_f32)))
    assert jnp.allclose(y, y_bf, atol=2e-3, rtol=2e-3), (
        f"{name}: mismatch vs bf16 reference, max|err|={err_bf}")
    assert jnp.allclose(y, y_f32, atol=3e-2, rtol=3e-2), (
        f"{name}: mismatch vs f32 reference, max|err|={err_f32}")


if __name__ == "__main__":
    key = jax.random.PRNGKey(0)
    k1, kx1, k2, kx2, k3, kx3 = jax.random.split(key, 6)

    # --- test 1: module-sized shapes, c from the module init (clamp branch) ---
    B1, in1, out1 = 8, 32, 16
    w1, b1, c1 = init_lipschitz_linear_params(k1, in1, out1)
    x1 = jax.random.normal(kx1, (B1, in1), jnp.float32)
    y1 = jax.block_until_ready(lipschitz_linear(x1, w1, b1, c1))
    assert y1.shape == (B1, out1)
    _check("test1", y1, x1, w1, b1, c1)

    # --- test 2: multi-tile grid (2 x 2 x 3) with padding and scale < 1 ---
    B2, in2, out2 = 32, 320, 192
    w2, b2, _ = init_lipschitz_linear_params(k2, in2, out2)
    c2 = jnp.float32(0.0)   # lipc = log(2) -> every row rescaled (< 1)
    x2 = jax.random.normal(kx2, (B2, in2), jnp.float32)
    y2 = jax.block_until_ready(
        lipschitz_linear(x2, w2, b2, c2, tm=16, tn=128, tk=128))
    assert y2.shape == (B2, out2)
    _check("test2", y2, x2, w2, b2, c2)

    # --- test 3: tile-aligned shapes -> no-pad fast path + out-axis split ---
    B3, in3, out3 = 64, 512, 256
    w3, b3, c3 = init_lipschitz_linear_params(k3, in3, out3)
    x3 = jax.random.normal(kx3, (B3, in3), jnp.float32)
    y3 = jax.block_until_ready(lipschitz_linear(x3, w3, b3, c3))
    assert y3.shape == (B3, out3)
    _check("test3", y3, x3, w3, b3, c3)

    print("KERNEL_OK")
</pallas_src>

<mosaic_0001>
module attributes {stable_mosaic.version = 11 : i64} {
  func.func @_lipschitz_linear_kernel(%arg0: i32, %arg1: i32, %arg2: i32, %arg3: memref<16x128xbf16, #tpu.memory_space<vmem>>, %arg4: memref<128x128xbf16, #tpu.memory_space<vmem>>, %arg5: memref<1x128xf32, #tpu.memory_space<vmem>>, %arg6: memref<1x128xf32, #tpu.memory_space<vmem>>, %arg7: memref<16x128xf32, #tpu.memory_space<vmem>>) attributes {dimension_semantics = [#tpu.dimension_semantics<parallel>, #tpu.dimension_semantics<parallel>, #tpu.dimension_semantics<arbitrary>], iteration_bounds = array<i64: 1, 1, 1>, scalar_prefetch = 0 : i64, scratch_operands = 0 : i64, tpu.core_type = #tpu.core_type<tc>, window_params = [{transform_indices = @transform_0, window_bounds = array<i64: 16, 128>}, {transform_indices = @transform_1, window_bounds = array<i64: 128, 128>}, {transform_indices = @transform_2, window_bounds = array<i64: 1, 128>}, {transform_indices = @transform_3, window_bounds = array<i64: 1, 128>}, {transform_indices = @transform_4, window_bounds = array<i64: 16, 128>}]} {
    %c0_i32 = arith.constant 0 : i32
    %0 = arith.cmpi eq, %arg2, %c0_i32 : i32
    %1 = arith.extui %0 : i1 to i32
    %c0_i32_0 = arith.constant 0 : i32
    %2 = arith.cmpi ne, %1, %c0_i32_0 : i32
    scf.if %2 {
      %cst_10 = arith.constant 0.000000e+00 : f32
      %12 = vector.broadcast %cst_10 : f32 to vector<16x128xf32>
      %c0_11 = arith.constant 0 : index
      %c0_12 = arith.constant 0 : index
      %13 = vector.load %arg7[%c0_11, %c0_12] : memref<16x128xf32, #tpu.memory_space<vmem>>, vector<16x128xf32>
      tpu.vector_store %arg7[%c0_11, %c0_12], %12 {strides = array<i32>} : memref<16x128xf32, #tpu.memory_space<vmem>>, vector<16x128xf32>,
    } else {
    }
    %c0 = arith.constant 0 : index
    %c0_1 = arith.constant 0 : index
    %3 = vector.load %arg7[%c0, %c0_1] : memref<16x128xf32, #tpu.memory_space<vmem>>, vector<16x128xf32>
    %c0_2 = arith.constant 0 : index
    %c0_3 = arith.constant 0 : index
    %4 = vector.load %arg3[%c0_2, %c0_3] : memref<16x128xbf16, #tpu.memory_space<vmem>>, vector<16x128xbf16>
    %c0_4 = arith.constant 0 : index
    %c0_5 = arith.constant 0 : index
    %5 = vector.load %arg4[%c0_4, %c0_5] : memref<128x128xbf16, #tpu.memory_space<vmem>>, vector<128x128xbf16>
    %cst = arith.constant dense<0.000000e+00> : vector<16x128xf32>
    %6 = tpu.matmul %4, %5, %cst {dimension_numbers = #tpu.dot_dimension_numbers<[1], [1], [0], [0], [0, 0, 1, 0], [], []>} : vector<16x128xbf16>, vector<128x128xbf16>, vector<16x128xf32> -> vector<16x128xf32>
    %7 = arith.addf %3, %6 : vector<16x128xf32>
    %c0_6 = arith.constant 0 : index
    %c0_7 = arith.constant 0 : index
    %8 = vector.load %arg7[%c0_6, %c0_7] : memref<16x128xf32, #tpu.memory_space<vmem>>, vector<16x128xf32>
    tpu.vector_store %arg7[%c0_6, %c0_7], %7 {strides = array<i32>} : memref<16x128xf32, #tpu.memory_space<vmem>>, vector<16x128xf32>,
    %c0_i32_8 = arith.constant 0 : i32
    %9 = arith.cmpi eq, %arg2, %c0_i32_8 : i32
    %10 = arith.extui %9 : i1 to i32
    %c0_i32_9 = arith.constant 0 : i32
    %11 = arith.cmpi ne, %10, %c0_i32_9 : i32
    scf.if %11 {
      %c0_10 = arith.constant 0 : index
      %c0_11 = arith.constant 0 : index
      %12 = vector.load %arg7[%c0_10, %c0_11] : memref<16x128xf32, #tpu.memory_space<vmem>>, vector<16x128xf32>
      %c0_12 = arith.constant 0 : index
      %c0_13 = arith.constant 0 : index
      %13 = vector.load %arg5[%c0_12, %c0_13] : memref<1x128xf32, #tpu.memory_space<vmem>>, vector<1x128xf32>
      %14 = vector.broadcast %13 : vector<1x128xf32> to vector<16x128xf32>
      %15 = arith.mulf %12, %14 : vector<16x128xf32>
      %c0_14 = arith.constant 0 : index
      %c0_15 = arith.constant 0 : index
      %16 = vector.load %arg6[%c0_14, %c0_15] : memref<1x128xf32, #tpu.memory_space<vmem>>, vector<1x128xf32>
      %17 = vector.broadcast %16 : vector<1x128xf32> to vector<16x128xf32>
      %18 = arith.addf %15, %17 : vector<16x128xf32>
      %c0_16 = arith.constant 0 : index
      %c0_17 = arith.constant 0 : index
      %19 = vector.load %arg7[%c0_16, %c0_17] : memref<16x128xf32, #tpu.memory_space<vmem>>, vector<16x128xf32>
      tpu.vector_store %arg7[%c0_16, %c0_17], %18 {strides = array<i32>} : memref<16x128xf32, #tpu.memory_space<vmem>>, vector<16x128xf32>,
    } else {
    }
    return
  }
  func.func @transform_0(%arg0: i32, %arg1: i32, %arg2: i32) -> (i32, i32) {
    %c0_i32 = arith.constant 0 : i32
    return %arg0, %arg2 : i32, i32
  }
  func.func @transform_1(%arg0: i32, %arg1: i32, %arg2: i32) -> (i32, i32) {
    %c0_i32 = arith.constant 0 : i32
    return %arg1, %arg2 : i32, i32
  }
  func.func @transform_2(%arg0: i32, %arg1: i32, %arg2: i32) -> (i32, i32) {
    %c0_i32 = arith.constant 0 : i32
    %c0_i32_0 = arith.constant 0 : i32
    return %c0_i32, %arg1 : i32, i32
  }
  func.func @transform_3(%arg0: i32, %arg1: i32, %arg2: i32) -> (i32, i32) {
    %c0_i32 = arith.constant 0 : i32
    %c0_i32_0 = arith.constant 0 : i32
    return %c0_i32, %arg1 : i32, i32
  }
  func.func @transform_4(%arg0: i32, %arg1: i32, %arg2: i32) -> (i32, i32) {
    %c0_i32 = arith.constant 0 : i32
    return %arg0, %arg1 : i32, i32
  }
}

</mosaic_0001>

<bundles_post_ra>
// kernel: lipschitz_linear.1
= control target key start
LH: loop header
LB: loop body
LE: loop exit
PB: predicated region body
PF: predicated region fallthrough
CT: control target
= control target key end

     0   :  { %s250_s1 = inlined_call_operand.vmem [shape: bf16[128,128], index: 1, kind: input, shape index: {}]   ;;  %s251_s2 = inlined_call_operand.vmem [shape: f32[1,128], index: 2, kind: input, shape index: {}]   ;;  %s252_s3 = inlined_call_operand.vmem [shape: f32[1,128], index: 3, kind: input, shape index: {}]   ;;  %s253_s0 = inlined_call_operand.vmem [shape: bf16[16,128], index: 0, kind: input, shape index: {}]   ;;  %s254_s4 = inlined_call_operand.vmem [shape: f32[16,128], index: 4, kind: output, shape index: {}]  }
   0x1   :  { %v182_v0 = vld [vmem:[%s250_s1 + $0x38] sm:$0xff]  ;;  %v181_v1 = vld [vmem:[%s250_s1 + $0x30] sm:$0xff]  ;;  %v180_v2 = vld [vmem:[%s250_s1 + $0x28] sm:$0xff] }
   0x2   :  { %97 = vmatpush.bf16.xpose.msra.mxu0 %v182_v0  ;;  %v179_v3 = vld [vmem:[%s250_s1 + $0x20] sm:$0xff]  ;;  %v178_v4 = vld [vmem:[%s250_s1 + $0x18] sm:$0xff]  ;;  %v177_v5 = vld [vmem:[%s250_s1 + $0x10] sm:$0xff] }
   0x3   :  { %v176_v6 = vld [vmem:[%s250_s1 + $0x8] sm:$0xff]  ;;  %v175_v7 = vld [vmem:[%s250_s1] sm:$0xff] }
   0x4   :  { %v174_v8 = vld [vmem:[%s253_s0] sm:$0xff] }
   0x5   :  { %v184_v9 = vld [vmem:[%s251_s2] ss:$0 sm:$0xff] }
   0x6   :  { %v185_v11 = vld [vmem:[%s252_s3] ss:$0 sm:$0xff] }
   0xa   :  { %98 = vmatpush.bf16.xpose.msra.mxu0 %v181_v1 }
  0x12   :  { %99 = vmatpush.bf16.xpose.msra.mxu0 %v180_v2 }
  0x1a   :  { %100 = vmatpush.bf16.xpose.msra.mxu0 %v179_v3 }
  0x22   :  { %101 = vmatpush.bf16.xpose.msra.mxu0 %v178_v4 }
  0x2a   :  { %102 = vmatpush.bf16.xpose.msra.mxu0 %v177_v5 }
  0x32   :  { %103 = vmatpush.bf16.xpose.msra.mxu0 %v176_v6 }
  0x3a   :  { %104 = vmatpush.bf16.xpose.msra.mxu0 %v175_v7 }
  0x41   :  { %105 = vmatmul.bf16.vlgmr.msra.gmra.mxu0 %v174_v8 }
  0xbe   :  { %v106_v10 = vpop.f32.mrf.mxu0 }
  0xbf   :  { %v124_v12 = vmul.f32 %v184_v9, %v106_v10 }
  0xc1   :  { %v130_v13 = vadd.f32 %v185_v11, %v124_v12 }
  0xc3   :  { %132 = vst [vmem:[%s254_s4] sm:$0xff] %v130_v13 }
  0xc6   :  { %v108_v14 = vpop.f32.mrf.mxu0 }
  0xc7   :  { %v125_v15 = vmul.f32 %v184_v9, %v108_v14 }
  0xc9   :  { %v131_v16 = vadd.f32 %v185_v11, %v125_v15 }
  0xcb   :  { %133 = vst [vmem:[%s254_s4 + $0x8] sm:$0xff] %v131_v16 }

</bundles_post_ra>
